<compile_context>
chip_gen: v7x
topology: tpu7x:2x2x1
jax: 0.10.0
libtpu: 0.0.40
codegen_flags: <defaults>
</compile_context>

<pallas_src>
import functools
import math

import jax
import jax.numpy as jnp
import numpy as np
from jax.experimental import pallas as pl
from jax.experimental.pallas import tpu as pltpu

_LANES = 128
_SUBK = 8  # source nodes per vectorized masked-reduce step (max/min path)


def _round_up(x: int, m: int) -> int:
    return (x + m - 1) // m * m


def _make_pool_kernel(pool_type: str):
    if pool_type == "max":
        fill = -jnp.inf
    elif pool_type == "min":
        fill = jnp.inf
    elif pool_type != "mean":
        raise ValueError(f"unsupported pool_type: {pool_type}")

    def kernel(adj_ref, feat_ref, out_ref, deg_ref):
        k = pl.program_id(1)

        @pl.when(k == 0)
        def _init():
            deg_ref[...] = jnp.zeros(deg_ref.shape, jnp.float32)
            if pool_type == "mean":
                out_ref[...] = jnp.zeros(out_ref.shape, jnp.float32)
            else:
                out_ref[...] = jnp.full(out_ref.shape, fill, jnp.float32)

        adj_blk = adj_ref[...].astype(jnp.float32)               # (TN, TK), exact 0/1
        # In-kernel in-degree accumulation: lane reduce (XLU), overlaps with
        # the MXU / VPU work below and avoids a second O(N^2) pass over adj.
        deg_ref[...] += jnp.sum(adj_blk, axis=1, keepdims=True)  # (TN, 1)

        if pool_type == "mean":
            # MXU path: accumulate partial neighbor-feature sums over K tiles
            # directly into the resident output block.
            out_ref[...] += jnp.dot(adj_blk, feat_ref[...],
                                    preferred_element_type=jnp.float32)
        else:
            op = jnp.maximum if pool_type == "max" else jnp.minimum
            red = jnp.max if pool_type == "max" else jnp.min
            feat_blk = feat_ref[...]                              # (TK, DP)
            tile_k = adj_blk.shape[1]
            acc = out_ref[...]
            # Chunked vectorized masked reduce: _SUBK source nodes at a time.
            # Static trip count = tile_k // _SUBK (independent of graph size).
            for j in range(tile_k // _SUBK):
                a = adj_blk[:, j * _SUBK:(j + 1) * _SUBK]         # (TN, SUBK)
                f = feat_blk[j * _SUBK:(j + 1) * _SUBK, :]        # (SUBK, DP)
                cand = jnp.where(a[:, :, None] > 0.0, f[None, :, :], fill)
                acc = op(acc, red(cand, axis=1))                  # (TN, DP)
            out_ref[...] = acc

        @pl.when(k == pl.num_programs(1) - 1)
        def _finalize():
            deg = deg_ref[...]                                    # (TN, 1)
            has_edge = deg > 0.0
            if pool_type == "mean":
                # Exact reciprocal (approx=True may miss the 1e-5 tolerance).
                inv = pl.reciprocal(jnp.maximum(deg, 1.0))
                out_ref[...] = jnp.where(has_edge, out_ref[...] * inv, 0.0)
            else:
                out_ref[...] = jnp.where(has_edge, out_ref[...], 0.0)

    return kernel


@functools.partial(jax.jit, static_argnames=("pool_type", "tile_n", "tile_k"))
def graph_pooling(adj, feat, *, pool_type: str, tile_n: int = 128, tile_k: int = None):
    """Pallas implementation of GraphPooling.forward(g, feat).

    adj : (N, N) float, adj[v, u] = 1.0 iff edge u -> v
    feat: (N, D) float node features
    """
    n, d = feat.shape
    assert adj.shape == (n, n)
    if tile_k is None:
        # Amortize per-grid-step overhead; cap so tiny graphs don't over-pad.
        tile_k = min(512, _round_up(n, _LANES))
    assert tile_n % 8 == 0 and tile_k % _LANES == 0

    # Zero padding is semantics-preserving: padded destination rows have
    # degree 0 (-> output 0, sliced off); padded source columns never
    # contribute (adjacency is 0 there).
    n_pad = _round_up(n, math.lcm(tile_n, tile_k))
    d_pad = _round_up(d, _LANES)

    adj_p = jnp.zeros((n_pad, n_pad), jnp.bfloat16).at[:n, :n].set(
        adj.astype(jnp.bfloat16))
    feat_p = jnp.zeros((n_pad, d_pad), jnp.float32).at[:n, :d].set(
        feat.astype(jnp.float32))

    grid = (n_pad // tile_n, n_pad // tile_k)

    cost = pl.CostEstimate(
        flops=2 * n_pad * n_pad * d_pad,
        transcendentals=0,
        bytes_accessed=(n_pad * n_pad * 2
                        + (n_pad // tile_n) * n_pad * d_pad * 4
                        + n_pad * d_pad * 4),
    )

    out = pl.pallas_call(
        _make_pool_kernel(pool_type),
        out_shape=jax.ShapeDtypeStruct((n_pad, d_pad), jnp.float32),
        grid_spec=pltpu.PrefetchScalarGridSpec(
            num_scalar_prefetch=0,
            grid=grid,
            in_specs=[
                pl.BlockSpec((tile_n, tile_k), lambda i, k: (i, k)),  # adj dst/src tile (bf16)
                pl.BlockSpec((tile_k, d_pad), lambda i, k: (k, 0)),   # feat source K-tile
            ],
            out_specs=pl.BlockSpec((tile_n, d_pad), lambda i, k: (i, 0)),
            scratch_shapes=[pltpu.VMEM((tile_n, 1), jnp.float32)],    # in-degree accumulator
        ),
        compiler_params=pltpu.CompilerParams(
            dimension_semantics=("parallel", "arbitrary"),
            vmem_limit_bytes=32 * 1024 * 1024,
        ),
        cost_estimate=cost,
    )(adj_p, feat_p)

    return out[:n, :d].astype(feat.dtype)


def _reference(adj, feat, pool_type):
    """Pure-JAX reference matching DGL update_all(copy_u, reduce)."""
    deg = jnp.sum(adj, axis=1, keepdims=True)
    has_edge = deg > 0.0
    if pool_type == "mean":
        s = adj @ feat
        return jnp.where(has_edge, s / jnp.maximum(deg, 1.0), 0.0)
    fill = -jnp.inf if pool_type == "max" else jnp.inf
    masked = jnp.where(adj[:, :, None] > 0.0, feat[None, :, :], fill)
    red = jnp.max(masked, axis=1) if pool_type == "max" else jnp.min(masked, axis=1)
    return jnp.where(has_edge, red, 0.0)


if __name__ == "__main__":
    key = jax.random.PRNGKey(0)
    k_adj, k_feat = jax.random.split(key)

    N, D = 16, 32  # small graph: 16 nodes, 32-dim node features

    # Deterministic random directed graph (dense adjacency, adj[v,u]: edge u->v).
    adj = jax.random.bernoulli(k_adj, p=0.3, shape=(N, N)).astype(jnp.float32)
    feat = jax.random.normal(k_feat, (N, D), dtype=jnp.float32)

    ok = True
    for pool_type in ("mean", "max", "min"):
        out = graph_pooling(adj, feat, pool_type=pool_type)
        out = jax.block_until_ready(out)
        ref = _reference(adj, feat, pool_type)
        if not np.allclose(np.asarray(out), np.asarray(ref), atol=1e-5, rtol=1e-5):
            ok = False
            print(f"MISMATCH for pool_type={pool_type}")

    if ok:
        print("KERNEL_OK")
</pallas_src>

<mosaic_0001>
module attributes {stable_mosaic.version = 11 : i64} {
  func.func @kernel(%arg0: i32, %arg1: i32, %arg2: memref<128x128xbf16, #tpu.memory_space<vmem>>, %arg3: memref<128x128xf32, #tpu.memory_space<vmem>>, %arg4: memref<128x128xf32, #tpu.memory_space<vmem>>, %arg5: memref<128x1xf32, #tpu.memory_space<vmem>>) attributes {dimension_semantics = [#tpu.dimension_semantics<parallel>, #tpu.dimension_semantics<arbitrary>], iteration_bounds = array<i64: 1, 1>, scalar_prefetch = 0 : i64, scratch_operands = 1 : i64, tpu.core_type = #tpu.core_type<tc>, window_params = [{transform_indices = @transform_0, window_bounds = array<i64: 128, 128>}, {transform_indices = @transform_1, window_bounds = array<i64: 128, 128>}, {transform_indices = @transform_2, window_bounds = array<i64: 128, 128>}]} {
    %c0_i32 = arith.constant 0 : i32
    %0 = arith.cmpi eq, %arg1, %c0_i32 : i32
    %1 = arith.extui %0 : i1 to i32
    %c0_i32_0 = arith.constant 0 : i32
    %2 = arith.cmpi ne, %1, %c0_i32_0 : i32
    scf.if %2 {
      %cst_15 = arith.constant 0.000000e+00 : f32
      %18 = vector.broadcast %cst_15 : f32 to vector<128x1xf32>
      %c0_16 = arith.constant 0 : index
      %c0_17 = arith.constant 0 : index
      %19 = vector.load %arg5[%c0_16, %c0_17] : memref<128x1xf32, #tpu.memory_space<vmem>>, vector<128x1xf32>
      tpu.vector_store %arg5[%c0_16, %c0_17], %18 {strides = array<i32>} : memref<128x1xf32, #tpu.memory_space<vmem>>, vector<128x1xf32>,
      %cst_18 = arith.constant 0.000000e+00 : f32
      %20 = vector.broadcast %cst_18 : f32 to vector<128x128xf32>
      %c0_19 = arith.constant 0 : index
      %c0_20 = arith.constant 0 : index
      %21 = vector.load %arg4[%c0_19, %c0_20] : memref<128x128xf32, #tpu.memory_space<vmem>>, vector<128x128xf32>
      tpu.vector_store %arg4[%c0_19, %c0_20], %20 {strides = array<i32>} : memref<128x128xf32, #tpu.memory_space<vmem>>, vector<128x128xf32>,
    } else {
    }
    %c0 = arith.constant 0 : index
    %c0_1 = arith.constant 0 : index
    %3 = vector.load %arg2[%c0, %c0_1] : memref<128x128xbf16, #tpu.memory_space<vmem>>, vector<128x128xbf16>
    %4 = arith.extf %3 : vector<128x128xbf16> to vector<128x128xf32>
    %c0_2 = arith.constant 0 : index
    %c0_3 = arith.constant 0 : index
    %5 = vector.load %arg5[%c0_2, %c0_3] : memref<128x1xf32, #tpu.memory_space<vmem>>, vector<128x1xf32>
    %cst = arith.constant dense<0.000000e+00> : vector<128xf32>
    %6 = vector.multi_reduction <add>, %4, %cst [1] : vector<128x128xf32> to vector<128xf32>
    %7 = vector.shape_cast %6 : vector<128xf32> to vector<128x1xf32>
    %8 = arith.addf %5, %7 : vector<128x1xf32>
    %c0_4 = arith.constant 0 : index
    %c0_5 = arith.constant 0 : index
    %9 = vector.load %arg5[%c0_4, %c0_5] : memref<128x1xf32, #tpu.memory_space<vmem>>, vector<128x1xf32>
    tpu.vector_store %arg5[%c0_4, %c0_5], %8 {strides = array<i32>} : memref<128x1xf32, #tpu.memory_space<vmem>>, vector<128x1xf32>,
    %c0_6 = arith.constant 0 : index
    %c0_7 = arith.constant 0 : index
    %10 = vector.load %arg4[%c0_6, %c0_7] : memref<128x128xf32, #tpu.memory_space<vmem>>, vector<128x128xf32>
    %c0_8 = arith.constant 0 : index
    %c0_9 = arith.constant 0 : index
    %11 = vector.load %arg3[%c0_8, %c0_9] : memref<128x128xf32, #tpu.memory_space<vmem>>, vector<128x128xf32>
    %cst_10 = arith.constant dense<0.000000e+00> : vector<128x128xf32>
    %12 = tpu.matmul %4, %11, %cst_10 {dimension_numbers = #tpu.dot_dimension_numbers<[1], [0], [0], [1], [0, 0, 1, 1], [], []>} : vector<128x128xf32>, vector<128x128xf32>, vector<128x128xf32> -> vector<128x128xf32>
    %13 = arith.addf %10, %12 : vector<128x128xf32>
    %c0_11 = arith.constant 0 : index
    %c0_12 = arith.constant 0 : index
    %14 = vector.load %arg4[%c0_11, %c0_12] : memref<128x128xf32, #tpu.memory_space<vmem>>, vector<128x128xf32>
    tpu.vector_store %arg4[%c0_11, %c0_12], %13 {strides = array<i32>} : memref<128x128xf32, #tpu.memory_space<vmem>>, vector<128x128xf32>,
    %c0_i32_13 = arith.constant 0 : i32
    %15 = arith.cmpi eq, %arg1, %c0_i32_13 : i32
    %16 = arith.extui %15 : i1 to i32
    %c0_i32_14 = arith.constant 0 : i32
    %17 = arith.cmpi ne, %16, %c0_i32_14 : i32
    scf.if %17 {
      %c0_15 = arith.constant 0 : index
      %c0_16 = arith.constant 0 : index
      %18 = vector.load %arg5[%c0_15, %c0_16] : memref<128x1xf32, #tpu.memory_space<vmem>>, vector<128x1xf32>
      %cst_17 = arith.constant 0.000000e+00 : f32
      %19 = vector.broadcast %cst_17 : f32 to vector<128x1xf32>
      %20 = arith.cmpf ogt, %18, %19 : vector<128x1xf32>
      %cst_18 = arith.constant 1.000000e+00 : f32
      %21 = vector.broadcast %cst_18 : f32 to vector<128x1xf32>
      %22 = arith.maximumf %18, %21 : vector<128x1xf32>
      %23 = tpu.reciprocal %22 : vector<128x1xf32> -> vector<128x1xf32>
      %c0_19 = arith.constant 0 : index
      %c0_20 = arith.constant 0 : index
      %24 = vector.load %arg4[%c0_19, %c0_20] : memref<128x128xf32, #tpu.memory_space<vmem>>, vector<128x128xf32>
      %25 = vector.broadcast %23 : vector<128x1xf32> to vector<128x128xf32>
      %26 = arith.mulf %24, %25 : vector<128x128xf32>
      %cst_21 = arith.constant 0.000000e+00 : f32
      %27 = vector.shape_cast %20 : vector<128x1xi1> to vector<128x1xi1>
      %28 = vector.broadcast %27 : vector<128x1xi1> to vector<128x128xi1>
      %29 = vector.broadcast %cst_21 : f32 to vector<128x128xf32>
      %30 = arith.select %28, %26, %29 : vector<128x128xi1>, vector<128x128xf32>
      %c0_22 = arith.constant 0 : index
      %c0_23 = arith.constant 0 : index
      %31 = vector.load %arg4[%c0_22, %c0_23] : memref<128x128xf32, #tpu.memory_space<vmem>>, vector<128x128xf32>
      tpu.vector_store %arg4[%c0_22, %c0_23], %30 {strides = array<i32>} : memref<128x128xf32, #tpu.memory_space<vmem>>, vector<128x128xf32>,
    } else {
    }
    return
  }
  func.func @transform_0(%arg0: i32, %arg1: i32) -> (i32, i32) {
    %c0_i32 = arith.constant 0 : i32
    return %arg0, %arg1 : i32, i32
  }
  func.func @transform_1(%arg0: i32, %arg1: i32) -> (i32, i32) {
    %c0_i32 = arith.constant 0 : i32
    %c0_i32_0 = arith.constant 0 : i32
    return %arg1, %c0_i32 : i32, i32
  }
  func.func @transform_2(%arg0: i32, %arg1: i32) -> (i32, i32) {
    %c0_i32 = arith.constant 0 : i32
    %c0_i32_0 = arith.constant 0 : i32
    return %arg0, %c0_i32 : i32, i32
  }
}

</mosaic_0001>

<bundles_post_ra>
// kernel: graph_pooling.1
= control target key start
LH: loop header
LB: loop body
LE: loop exit
PB: predicated region body
PF: predicated region fallthrough
CT: control target
= control target key end

     0   :  { %vm15_vm0 = vcmask 7168   ;;  %v876_v2 = vmov 0.0   ;;  %v877_v49 = vmov 0   ;;  %s1184_s0 = inlined_call_operand.vmem [shape: bf16[128,128], index: 0, kind: input, shape index: {}]   ;;  %s1185_s1 = inlined_call_operand.vmem [shape: f32[128,128], index: 1, kind: input, shape index: {}]   ;;  %s1186_s2 = inlined_call_operand.vmem [shape: f32[128,128], index: 2, kind: output, shape index: {}]  }
   0x1   :  { %v896_v0 = vld [vmem:[%s1184_s0] sm:$0xff]   ;;  %v901_v1 = vld [vmem:[%s1184_s0 + $0x8] sm:$0xff]   ;;  %16 = vst.msk [vmem:[#allocation2] sm:$0xff] %vm15_vm0, %v876_v2  ;;  %17 = vst.msk [vmem:[#allocation2 + $0x8] sm:$0xff] %vm15_vm0, %v876_v2  ;;  %842 = vset.pattern.permute.xlu1 %v877_v49  ;;  %843 = vset.pattern.permute.xlu0 %v877_v49 }
   0x2   :  { %18 = vst.msk [vmem:[#allocation2 + $0x10] sm:$0xff] %vm15_vm0, %v876_v2  ;;  %19 = vst.msk [vmem:[#allocation2 + $0x18] sm:$0xff] %vm15_vm0, %v876_v2  ;;  %v667_v3 = vunpack.c.l.bf16 %v896_v0  ;;  %v671_v4 = vunpack.c.l.bf16 %v901_v1  ;;  %v924_v5 = vld [vmem:[%s1184_s0 + $0x20] sm:$0xff]   ;;  %v668_v7 = vunpack.c.h.bf16 %v896_v0  ;;  %v672_v8 = vunpack.c.h.bf16 %v901_v1  ;;  %v178_v10 = vld [vmem:[%s1185_s1 + $0x8] sm:$0xff] }
   0x3   :  { %20 = vst.msk [vmem:[#allocation2 + $0x20] sm:$0xff] %vm15_vm0, %v876_v2  ;;  %21 = vst.msk [vmem:[#allocation2 + $0x28] sm:$0xff] %vm15_vm0, %v876_v2  ;;  %v177_v6 = vld [vmem:[%s1185_s1] sm:$0xff]  ;;  %v683_v9 = vunpack.c.l.bf16 %v924_v5  ;;  %v179_v11 = vld [vmem:[%s1185_s1 + $0x10] sm:$0xff]  ;;  %v684_v29 = vunpack.c.h.bf16 %v924_v5 }
   0x4   :  { %22 = vst.msk [vmem:[#allocation2 + $0x30] sm:$0xff] %vm15_vm0, %v876_v2  ;;  %23 = vst.msk [vmem:[#allocation2 + $0x38] sm:$0xff] %vm15_vm0, %v876_v2  ;;  %96 = vadd.xlane.f32.xlu0 %v667_v3  ;;  %100 = vadd.xlane.f32.xlu1 %v671_v4  ;;  %v180_v12 = vld [vmem:[%s1185_s1 + $0x18] sm:$0xff]  ;;  %v946_v13 = vld [vmem:[%s1184_s0 + $0x10] sm:$0xff]   ;;  %v792_v14 = vpack.c.bf16 %v178_v10, %v177_v6 }
   0x5   :  { %24 = vst.msk [vmem:[#allocation2 + $0x40] sm:$0xff] %vm15_vm0, %v876_v2  ;;  %25 = vst.msk [vmem:[#allocation2 + $0x48] sm:$0xff] %vm15_vm0, %v876_v2  ;;  %768 = vmatprep.mubr.f32.mxu0 %v667_v3  ;;  %v796_v15 = vpack.c.bf16 %v180_v12, %v179_v11  ;;  %780 = vmatprep.mubr.f32.mxu1 %v683_v9  ;;  %v181_v16 = vld [vmem:[%s1185_s1 + $0x20] sm:$0xff]  ;;  %v182_v17 = vld [vmem:[%s1185_s1 + $0x28] sm:$0xff]  ;;  %v675_v18 = vunpack.c.l.bf16 %v946_v13  ;;  %v676_v19 = vunpack.c.h.bf16 %v946_v13 }
   0x6   :  { %26 = vst.msk [vmem:[#allocation2 + $0x50] sm:$0xff] %vm15_vm0, %v876_v2  ;;  %27 = vst.msk [vmem:[#allocation2 + $0x58] sm:$0xff] %vm15_vm0, %v876_v2  ;;  %793 = vmatprep.subr.bf16.mxu0 %v792_v14  ;;  %824 = vmatprep.subr.bf16.mxu1 %v792_v14  ;;  %v963_v20 = vld [vmem:[%s1184_s0 + $0x18] sm:$0xff]   ;;  %v800_v21 = vpack.c.bf16 %v182_v17, %v181_v16  ;;  %v183_v22 = vld [vmem:[%s1185_s1 + $0x30] sm:$0xff] }
   0x7   :  { %28 = vst.msk [vmem:[#allocation2 + $0x60] sm:$0xff] %vm15_vm0, %v876_v2  ;;  %29 = vst.msk [vmem:[#allocation2 + $0x68] sm:$0xff] %vm15_vm0, %v876_v2  ;;  %795 = vmatpush3.bf16.msra.mxu0 %v792_v14  ;;  %832 = vmatpush3.bf16.msra.mxu1 %v792_v14  ;;  %v184_v23 = vld [vmem:[%s1185_s1 + $0x38] sm:$0xff]  ;;  %v679_v24 = vunpack.c.l.bf16 %v963_v20  ;;  %v680_v25 = vunpack.c.h.bf16 %v963_v20  ;;  %v185_v27 = vld [vmem:[%s1185_s1 + $0x40] sm:$0xff] }
   0x8   :  { %30 = vst.msk [vmem:[#allocation2 + $0x70] sm:$0xff] %vm15_vm0, %v876_v2  ;;  %31 = vst.msk [vmem:[#allocation2 + $0x78] sm:$0xff] %vm15_vm0, %v876_v2  ;;  %98 = vadd.xlane.f32.xlu0 %v668_v7  ;;  %102 = vadd.xlane.f32.xlu1 %v672_v8  ;;  %v804_v26 = vpack.c.bf16 %v184_v23, %v183_v22  ;;  %v186_v28 = vld [vmem:[%s1185_s1 + $0x48] sm:$0xff]  ;;  %v187_v32 = vld [vmem:[%s1185_s1 + $0x50] sm:$0xff] }
   0x9   :  { %797 = vmatprep.subr.bf16.mxu0 %v796_v15  ;;  %825 = vmatprep.subr.bf16.mxu1 %v796_v15  ;;  %v701_v30 = vld [vmem:[%s1184_s0 + $0x28] sm:$0xff]   ;;  %v808_v31 = vpack.c.bf16 %v186_v28, %v185_v27  ;;  %v188_v33 = vld [vmem:[%s1185_s1 + $0x58] sm:$0xff]  ;;  %v702_v36 = vld [vmem:[%s1184_s0 + $0x30] sm:$0xff]  }
   0xa   :  { %v687_v34 = vunpack.c.l.bf16 %v701_v30  ;;  %v688_v35 = vunpack.c.h.bf16 %v701_v30  ;;  %v812_v37 = vpack.c.bf16 %v188_v33, %v187_v32  ;;  %v189_v38 = vld [vmem:[%s1185_s1 + $0x60] sm:$0xff]  ;;  %v190_v39 = vld [vmem:[%s1185_s1 + $0x68] sm:$0xff]  ;;  %v691_v40 = vunpack.c.l.bf16 %v702_v36  ;;  %v703_v42 = vld [vmem:[%s1184_s0 + $0x38] sm:$0xff]  }
   0xb   :  { %799 = vmatpush3.bf16.msra.mxu0 %v796_v15  ;;  %833 = vmatpush3.bf16.msra.mxu1 %v796_v15  ;;  %v692_v41 = vunpack.c.h.bf16 %v702_v36  ;;  %v816_v43 = vpack.c.bf16 %v190_v39, %v189_v38  ;;  %v191_v44 = vld [vmem:[%s1185_s1 + $0x70] sm:$0xff]  ;;  %v192_v45 = vld [vmem:[%s1185_s1 + $0x78] sm:$0xff]  ;;  %v696_v46 = vunpack.c.h.bf16 %v703_v42  ;;  %v695_v47 = vunpack.c.l.bf16 %v703_v42  ;;  %v80_v50 = vld [vmem:[#allocation2] sm:$0xff] }
   0xc   :  { %104 = vadd.xlane.f32.xlu0 %v675_v18  ;;  %106 = vadd.xlane.f32.xlu1 %v676_v19  ;;  %v820_v48 = vpack.c.bf16 %v192_v45, %v191_v44  ;;  %v82_v51 = vld [vmem:[#allocation2 + $0x10] sm:$0xff]  ;;  %v81_v56 = vld [vmem:[#allocation2 + $0x8] sm:$0xff]  ;;  %v83_v57 = vld [vmem:[#allocation2 + $0x18] sm:$0xff] }
   0xd   :  { %801 = vmatprep.subr.bf16.mxu0 %v800_v21  ;;  %826 = vmatprep.subr.bf16.mxu1 %v800_v21  ;;  %v84_v62 = vld [vmem:[#allocation2 + $0x20] sm:$0xff]  ;;  %v85_v63 = vld [vmem:[#allocation2 + $0x28] sm:$0xff]  ;;  %v87_v6 = vld [vmem:[#allocation2 + $0x38] sm:$0xff] }
   0xe   :  { %v88_v13 = vld [vmem:[#allocation2 + $0x40] sm:$0xff]  ;;  %v89_v16 = vld [vmem:[#allocation2 + $0x48] sm:$0xff]  ;;  %v90_v23 = vld [vmem:[#allocation2 + $0x50] sm:$0xff] }
   0xf   :  { %803 = vmatpush3.bf16.msra.mxu0 %v800_v21  ;;  %834 = vmatpush3.bf16.msra.mxu1 %v800_v21  ;;  %v92_v33 = vld [vmem:[#allocation2 + $0x60] sm:$0xff]  ;;  %v93_v36 = vld [vmem:[#allocation2 + $0x68] sm:$0xff] }
  0x10   :  { %108 = vadd.xlane.f32.xlu0 %v679_v24  ;;  %110 = vadd.xlane.f32.xlu1 %v680_v25 }
  0x11   :  { %805 = vmatprep.subr.bf16.mxu0 %v804_v26  ;;  %827 = vmatprep.subr.bf16.mxu1 %v804_v26 }
  0x13   :  { %807 = vmatpush3.bf16.msra.mxu0 %v804_v26  ;;  %835 = vmatpush3.bf16.msra.mxu1 %v804_v26  ;;  %v91_v26 = vld [vmem:[#allocation2 + $0x58] sm:$0xff] }
  0x14   :  { %112 = vadd.xlane.f32.xlu0 %v683_v9  ;;  %114 = vadd.xlane.f32.xlu1 %v684_v29 }
  0x15   :  { %809 = vmatprep.subr.bf16.mxu0 %v808_v31  ;;  %828 = vmatprep.subr.bf16.mxu1 %v808_v31 }
  0x17   :  { %811 = vmatpush3.bf16.msra.mxu0 %v808_v31  ;;  %836 = vmatpush3.bf16.msra.mxu1 %v808_v31 }
  0x18   :  { %116 = vadd.xlane.f32.xlu0 %v687_v34  ;;  %118 = vadd.xlane.f32.xlu1 %v688_v35 }
  0x19   :  { %813 = vmatprep.subr.bf16.mxu0 %v812_v37  ;;  %829 = vmatprep.subr.bf16.mxu1 %v812_v37 }
  0x1b   :  { %815 = vmatpush3.bf16.msra.mxu0 %v812_v37  ;;  %837 = vmatpush3.bf16.msra.mxu1 %v812_v37 }
  0x1c   :  { %120 = vadd.xlane.f32.xlu0 %v691_v40  ;;  %122 = vadd.xlane.f32.xlu1 %v692_v41 }
  0x1d   :  { %817 = vmatprep.subr.bf16.mxu0 %v816_v43  ;;  %830 = vmatprep.subr.bf16.mxu1 %v816_v43 }
  0x1f   :  { %819 = vmatpush3.bf16.msra.mxu0 %v816_v43  ;;  %838 = vmatpush3.bf16.msra.mxu1 %v816_v43  ;;  %v95_v43 = vld [vmem:[#allocation2 + $0x78] sm:$0xff] }
  0x20   :  { %126 = vadd.xlane.f32.xlu1 %v696_v46  ;;  %124 = vadd.xlane.f32.xlu0 %v695_v47 }
  0x21   :  { %821 = vmatprep.subr.bf16.mxu0 %v820_v48  ;;  %831 = vmatprep.subr.bf16.mxu1 %v820_v48 }
  0x23   :  { %823 = vmatpush3.bf16.msra.mxu0 %v820_v48  ;;  %839 = vmatpush3.bf16.msra.mxu1 %v820_v48  ;;  %v94_v48 = vld [vmem:[#allocation2 + $0x70] sm:$0xff] }
  0x26   :  { %769 = vmatmul.mubr.f32.vlgmr.msra.gmra.mrb[0].mxu0 %v668_v7  ;;  %781 = vmatmul.mubr.f32.vlgmr.msra.gmra.mrb[0].mxu1 %v684_v29 }
  0x27   :  { %771 = vmatprep.mubr.f32.mxu0 %v671_v4  ;;  %783 = vmatprep.mubr.f32.mxu1 %v687_v34  ;;  %v86_v4 = vld [vmem:[#allocation2 + $0x30] sm:$0xff] }
  0x2a   :  { %772 = vmatmul.mubr.f32.gmra.mrb[2].mxu0 %v672_v8  ;;  %784 = vmatmul.mubr.f32.gmra.mrb[2].mxu1 %v688_v35 }
  0x2b   :  { %774 = vmatprep.mubr.f32.mxu0 %v675_v18  ;;  %786 = vmatprep.mubr.f32.mxu1 %v691_v40 }
  0x2e   :  { %775 = vmatmul.mubr.f32.gmra.mrb[4].mxu0 %v676_v19  ;;  %787 = vmatmul.mubr.f32.gmra.mrb[4].mxu1 %v692_v41 }
  0x2f   :  { %777 = vmatprep.mubr.f32.mxu0 %v679_v24  ;;  %789 = vmatprep.mubr.f32.mxu1 %v695_v47 }
  0x32   :  { %778 = vmatmul.mubr.f32.gmra.mrb[6].mxu0 %v680_v25  ;;  %790 = vmatmul.mubr.f32.gmra.mrb[6].mxu1 %v696_v46 }
  0x91   :  { %v97_v52 = vpop.xlane.xlu0 %96  ;;  %v101_v53 = vpop.xlane.xlu1 %100 }
  0x92   :  { %v128_v54 = vadd.f32 %v97_v52, %v80_v50  ;;  %v130_v55 = vadd.f32 %v101_v53, %v82_v51 }
  0x94   :  { %145 = vst.msk [vmem:[#allocation2] sm:$0xff] %vm15_vm0, %v128_v54  ;;  %147 = vst.msk [vmem:[#allocation2 + $0x10] sm:$0xff] %vm15_vm0, %v130_v55 }
  0x95   :  { %v99_v58 = vpop.xlane.xlu0 %98  ;;  %v103_v59 = vpop.xlane.xlu1 %102 }
  0x96   :  { %v129_v60 = vadd.f32 %v99_v58, %v81_v56  ;;  %v131_v61 = vadd.f32 %v103_v59, %v83_v57 }
  0x98   :  { %146 = vst.msk [vmem:[#allocation2 + $0x8] sm:$0xff] %vm15_vm0, %v129_v60  ;;  %148 = vst.msk [vmem:[#allocation2 + $0x18] sm:$0xff] %vm15_vm0, %v131_v61 }
  0x99   :  { %v105_v0 = vpop.xlane.xlu0 %104  ;;  %v107_v1 = vpop.xlane.xlu1 %106 }
  0x9a   :  { %v132_v2 = vadd.f32 %v105_v0, %v84_v62  ;;  %v133_v3 = vadd.f32 %v107_v1, %v85_v63 }
  0x9b   :  { %v1035_v5 = vld [vmem:[#allocation2] sm:$0xff]  ;;  %v1037_v7 = vld [vmem:[#allocation2 + $0x10] sm:$0xff] }
  0x9c   :  { %149 = vst.msk [vmem:[#allocation2 + $0x20] sm:$0xff] %vm15_vm0, %v132_v2  ;;  %150 = vst.msk [vmem:[#allocation2 + $0x28] sm:$0xff] %vm15_vm0, %v133_v3  ;;  %vm389_vm1 = vcmp.gt.f32.partialorder %v1035_v5, 0.0  ;;  %vm391_vm2 = vcmp.gt.f32.partialorder %v1037_v7, 0.0  ;;  %v405_v53 = vmax.f32 %v1035_v5, 1.0  ;;  %v407_v56 = vmax.f32 %v1037_v7, 1.0 }
  0x9d   :  { %v109_v8 = vpop.xlane.xlu0 %108  ;;  %v549_v9 = vsel %vm389_vm1, 1, %v877_v49  ;;  %v111_v10 = vpop.xlane.xlu1 %110  ;;  %v551_v14 = vsel %vm391_vm2, 1, %v877_v49 }
  0x9e   :  { %v134_v11 = vadd.f32 %v109_v8, %v86_v4  ;;  %566 = vperm.xlu1 %842, %v549_v9   ;;  %v135_v12 = vadd.f32 %v111_v10, %v87_v6 }
  0x9f   :  { %v1045_v15 = vld [vmem:[#allocation2 + $0x8] sm:$0xff]  ;;  %v1047_v17 = vld [vmem:[#allocation2 + $0x18] sm:$0xff] }
  0xa0   :  { %151 = vst.msk [vmem:[#allocation2 + $0x30] sm:$0xff] %vm15_vm0, %v134_v11  ;;  %152 = vst.msk [vmem:[#allocation2 + $0x38] sm:$0xff] %vm15_vm0, %v135_v12  ;;  %vm390_vm3 = vcmp.gt.f32.partialorder %v1045_v15, 0.0  ;;  %vm392_vm4 = vcmp.gt.f32.partialorder %v1047_v17, 0.0  ;;  %v406_v44 = vmax.f32 %v1045_v15, 1.0  ;;  %v408_v60 = vmax.f32 %v1047_v17, 1.0 }
  0xa1   :  { %v113_v18 = vpop.xlane.xlu0 %112  ;;  %v550_v19 = vsel %vm390_vm3, 1, %v877_v49  ;;  %v115_v20 = vpop.xlane.xlu1 %114  ;;  %v552_v24 = vsel %vm392_vm4, 1, %v877_v49 }
  0xa2   :  { %v136_v21 = vadd.f32 %v113_v18, %v88_v13  ;;  %572 = vperm.xlu1 %842, %v551_v14   ;;  %569 = vperm.xlu0 %843, %v550_v19   ;;  %v137_v22 = vadd.f32 %v115_v20, %v89_v16  ;;  %844 = vrcp.f32 %v406_v44 }
  0xa3   :  { %v1055_v25 = vld [vmem:[#allocation2 + $0x20] sm:$0xff]  ;;  %v1057_v27 = vld [vmem:[#allocation2 + $0x28] sm:$0xff]  ;;  %846 = vrcp.f32 %v405_v53 }
  0xa4   :  { %153 = vst.msk [vmem:[#allocation2 + $0x40] sm:$0xff] %vm15_vm0, %v136_v21  ;;  %154 = vst.msk [vmem:[#allocation2 + $0x48] sm:$0xff] %vm15_vm0, %v137_v22  ;;  %vm393_vm5 = vcmp.gt.f32.partialorder %v1055_v25, 0.0  ;;  %vm394_vm6 = vcmp.gt.f32.partialorder %v1057_v27, 0.0  ;;  %848 = vrcp.f32 %v407_v56  ;;  %v409_v4 = vmax.f32 %v1055_v25, 1.0 }
  0xa5   :  { %v117_v28 = vpop.xlane.xlu0 %116  ;;  %v553_v29 = vsel %vm393_vm5, 1, %v877_v49  ;;  %v119_v30 = vpop.xlane.xlu1 %118  ;;  %v554_v34 = vsel %vm394_vm6, 1, %v877_v49  ;;  %850 = vrcp.f32 %v408_v60  ;;  %v410_v6 = vmax.f32 %v1057_v27, 1.0 }
  0xa6   :  { %v138_v31 = vadd.f32 %v117_v28, %v90_v23  ;;  %575 = vperm.xlu0 %843, %v552_v24   ;;  %578 = vperm.xlu1 %842, %v553_v29   ;;  %v139_v32 = vadd.f32 %v119_v30, %v91_v26 }
  0xa7   :  { %v1065_v35 = vld [vmem:[#allocation2 + $0x30] sm:$0xff]  ;;  %v1067_v37 = vld [vmem:[#allocation2 + $0x38] sm:$0xff] }
  0xa8   :  { %155 = vst.msk [vmem:[#allocation2 + $0x50] sm:$0xff] %vm15_vm0, %v138_v31  ;;  %156 = vst.msk [vmem:[#allocation2 + $0x58] sm:$0xff] %vm15_vm0, %v139_v32  ;;  %vm395_vm7 = vcmp.gt.f32.partialorder %v1065_v35, 0.0  ;;  %vm396_vm8 = vcmp.gt.f32.partialorder %v1067_v37, 0.0  ;;  %v411_v15 = vmax.f32 %v1065_v35, 1.0  ;;  %v412_v17 = vmax.f32 %v1067_v37, 1.0 }
  0xa9   :  { %v121_v38 = vpop.xlane.xlu0 %120  ;;  %v555_v39 = vsel %vm395_vm7, 1, %v877_v49  ;;  %v123_v40 = vpop.xlane.xlu1 %122  ;;  %v556_v45 = vsel %vm396_vm8, 1, %v877_v49 }
  0xaa   :  { %v140_v41 = vadd.f32 %v121_v38, %v92_v33  ;;  %581 = vperm.xlu0 %843, %v554_v34   ;;  %584 = vperm.xlu1 %842, %v555_v39   ;;  %v141_v42 = vadd.f32 %v123_v40, %v93_v36 }
  0xab   :  { %v1076_v46 = vld [vmem:[#allocation2 + $0x40] sm:$0xff]  ;;  %v382_v47 = vld [vmem:[#allocation2 + $0x48] sm:$0xff] }
  0xac   :  { %157 = vst.msk [vmem:[#allocation2 + $0x60] sm:$0xff] %vm15_vm0, %v140_v41  ;;  %158 = vst.msk [vmem:[#allocation2 + $0x68] sm:$0xff] %vm15_vm0, %v141_v42  ;;  %vm397_vm9 = vcmp.gt.f32.partialorder %v1076_v46, 0.0  ;;  %vm398_vm10 = vcmp.gt.f32.partialorder %v382_v47, 0.0  ;;  %v414_v61 = vmax.f32 %v382_v47, 1.0  ;;  %v845_v7 = vpop.eup %844  ;;  %v413_v21 = vmax.f32 %v1076_v46, 1.0 }
  0xad   :  { %v557_v50 = vsel %vm397_vm9, 1, %v877_v49  ;;  %v127_v51 = vpop.xlane.xlu1 %126  ;;  %v125_v52 = vpop.xlane.xlu0 %124  ;;  %v558_v57 = vsel %vm398_vm10, 1, %v877_v49 }
  0xae   :  { %587 = vperm.xlu0 %843, %v556_v45   ;;  %590 = vperm.xlu1 %842, %v557_v50   ;;  %v143_v54 = vadd.f32 %v127_v51, %v95_v43  ;;  %v142_v55 = vadd.f32 %v125_v52, %v94_v48  ;;  %852 = vrcp.f32 %v414_v61  ;;  %v847_v10 = vpop.eup %846 }
  0xaf   :  { %v1085_v58 = vld [vmem:[#allocation2 + $0x50] sm:$0xff]  ;;  %v384_v59 = vld [vmem:[#allocation2 + $0x58] sm:$0xff]  ;;  %v849_v11 = vpop.eup %848 }
  0xb0   :  { %vm399_vm11 = vcmp.gt.f32.partialorder %v1085_v58, 0.0  ;;  %160 = vst.msk [vmem:[#allocation2 + $0x78] sm:$0xff] %vm15_vm0, %v143_v54  ;;  %vm400_vm12 = vcmp.gt.f32.partialorder %v384_v59, 0.0  ;;  %159 = vst.msk [vmem:[#allocation2 + $0x70] sm:$0xff] %vm15_vm0, %v142_v55  ;;  %v416_v2 = vmax.f32 %v384_v59, 1.0  ;;  %v851_v13 = vpop.eup %850  ;;  %v415_v23 = vmax.f32 %v1085_v58, 1.0 }
  0xb1   :  { %v559_v62 = vsel %vm399_vm11, 1, %v877_v49  ;;  %v560_v63 = vsel %vm400_vm12, 1, %v877_v49 }
  0xb2   :  { %593 = vperm.xlu0 %843, %v558_v57   ;;  %596 = vperm.xlu1 %842, %v559_v62   ;;  %854 = vrcp.f32 %v416_v2 }
  0xb3   :  { %v385_v0 = vld [vmem:[#allocation2 + $0x60] sm:$0xff]  ;;  %v386_v1 = vld [vmem:[#allocation2 + $0x68] sm:$0xff]  ;;  %856 = vrcp.f32 %v409_v4 }
  0xb4   :  { %vm401_vm13 = vcmp.gt.f32.partialorder %v385_v0, 0.0  ;;  %vm402_vm14 = vcmp.gt.f32.partialorder %v386_v1, 0.0  ;;  %v418_v8 = vmax.f32 %v386_v1, 1.0  ;;  %858 = vrcp.f32 %v410_v6 }
  0xb5   :  { %v561_v3 = vsel %vm401_vm13, 1, %v877_v49  ;;  %v562_v5 = vsel %vm402_vm14, 1, %v877_v49  ;;  %v417_v26 = vmax.f32 %v385_v0, 1.0 }
  0xb6   :  { %599 = vperm.xlu0 %843, %v560_v63   ;;  %602 = vperm.xlu1 %842, %v561_v3   ;;  %860 = vrcp.f32 %v418_v8 }
  0xb7   :  { %v388_v9 = vld [vmem:[#allocation2 + $0x78] sm:$0xff]  ;;  %v387_v25 = vld [vmem:[#allocation2 + $0x70] sm:$0xff] }
  0xb8   :  { %v420_v12 = vmax.f32 %v388_v9, 1.0  ;;  %v853_v14 = vpop.eup %852  ;;  %vm404_vm15 = vcmp.gt.f32.partialorder %v388_v9, 0.0  ;;  %v419_v29 = vmax.f32 %v387_v25, 1.0  ;;  %vm403_vm0 = vcmp.gt.f32.partialorder %v387_v25, 0.0 }
  0xb9   :  { %v564_v27 = vsel %vm404_vm15, 1, %v877_v49  ;;  %v563_v34 = vsel %vm403_vm0, 1, %v877_v49 }
  0xba   :  { %605 = vperm.xlu0 %843, %v562_v5   ;;  %460 = vperm.xlu1 %842, %v845_v7   ;;  %862 = vrcp.f32 %v420_v12 }
  0xbb   :  { %864 = vrcp.f32 %v411_v15 }
  0xbc   :  { %v855_v16 = vpop.eup %854  ;;  %866 = vrcp.f32 %v412_v17 }
  0xbd   :  { %v857_v18 = vpop.eup %856  ;;  %868 = vrcp.f32 %v413_v21 }
  0xbe   :  { %455 = vperm.xlu0 %843, %v847_v10   ;;  %465 = vperm.xlu1 %842, %v849_v11   ;;  %v859_v19 = vpop.eup %858  ;;  %870 = vrcp.f32 %v415_v23 }
  0xbf   :  { %872 = vrcp.f32 %v417_v26 }
  0xc0   :  { %v861_v20 = vpop.eup %860  ;;  %874 = vrcp.f32 %v419_v29 }
  0xc2   :  { %500 = vperm.xlu0 %843, %v853_v14   ;;  %470 = vperm.xlu1 %842, %v851_v13  }
  0xc4   :  { %v863_v22 = vpop.eup %862 }
  0xc5   :  { %v865_v24 = vpop.eup %864 }
  0xc6   :  { %510 = vperm.xlu0 %843, %v855_v16   ;;  %475 = vperm.xlu1 %842, %v857_v18   ;;  %v867_v28 = vpop.eup %866 }
  0xc7   :  { %v869_v30 = vpop.eup %868 }
  0xc8   :  { %v871_v31 = vpop.eup %870 }
  0xc9   :  { %v873_v32 = vpop.eup %872 }
  0xca   :  { %520 = vperm.xlu0 %843, %v861_v20   ;;  %480 = vperm.xlu1 %842, %v859_v19   ;;  %v875_v33 = vpop.eup %874 }
  0xce   :  { %530 = vperm.xlu0 %843, %v863_v22   ;;  %485 = vperm.xlu1 %842, %v865_v24  }
  0xd2   :  { %611 = vperm.xlu0 %843, %v564_v27   ;;  %490 = vperm.xlu1 %842, %v867_v28  }
  0xd6   :  { %495 = vperm.xlu1 %842, %v869_v30  }
  0xda   :  { %505 = vperm.xlu1 %842, %v871_v31  }
  0xde   :  { %515 = vperm.xlu1 %842, %v873_v32  }
  0xe2   :  { %525 = vperm.xlu1 %842, %v875_v33  }
  0xe6   :  { %608 = vperm.xlu1 %842, %v563_v34  }
  0xf9   :  { %v770_v35 = vpop.f32.mrb[0].mxu0  ;;  %v782_v36 = vpop.f32.mrb[0].mxu1 }
  0xfa   :  { %v259_v37 = vpop.f32.mrb[1].mxu0  ;;  %v1103_v38 = vpop.f32.mrb[1].mxu1 }
  0xfd   :  { %v773_v39 = vpop.f32.mrb[2].mxu0  ;;  %v785_v40 = vpop.f32.mrb[2].mxu1 }
  0xfe   :  { %v269_v41 = vpop.f32.mrb[3].mxu0  ;;  %v1105_v42 = vpop.f32.mrb[3].mxu1 }
 0x101   :  { %v776_v43 = vpop.f32.mrb[4].mxu0  ;;  %v788_v44 = vpop.f32.mrb[4].mxu1 }
 0x102   :  { %v279_v45 = vpop.f32.mrb[5].mxu0  ;;  %v1107_v46 = vpop.f32.mrb[5].mxu1 }
 0x105   :  { %v1109_v47 = vpop.f32.mrb[6].mxu0  ;;  %v1111_v48 = vpop.f32.mrb[6].mxu1 }
 0x106   :  { %v1113_v49 = vpop.f32.mrb[7].mxu0  ;;  %v1115_v50 = vpop.f32.mrb[7].mxu1 }
 0x11d   :  { %v567_v51 = vpop.permute.xlu1 %566 }
 0x11e   :  { %vm613_vm2 = vcmp.eq.s32.totalorder %v567_v51, 1 }
 0x121   :  { %v573_v52 = vpop.permute.xlu1 %572  ;;  %v570_v53 = vpop.permute.xlu0 %569 }
 0x122   :  { %vm614_vm1 = vcmp.eq.s32.totalorder %v570_v53, 1  ;;  %vm615_vm3 = vcmp.eq.s32.totalorder %v573_v52, 1 }
 0x125   :  { %v579_v54 = vpop.permute.xlu1 %578  ;;  %v576_v55 = vpop.permute.xlu0 %575 }
 0x126   :  { %vm616_vm4 = vcmp.eq.s32.totalorder %v576_v55, 1  ;;  %vm617_vm6 = vcmp.eq.s32.totalorder %v579_v54, 1 }
 0x129   :  { %v585_v56 = vpop.permute.xlu1 %584  ;;  %v582_v57 = vpop.permute.xlu0 %581 }
 0x12a   :  { %vm618_vm8 = vcmp.eq.s32.totalorder %v582_v57, 1  ;;  %vm619_vm10 = vcmp.eq.s32.totalorder %v585_v56, 1 }
 0x12d   :  { %v1117_v58 = vpop.permute.xlu1 %590  ;;  %v1119_v59 = vpop.permute.xlu0 %587 }
 0x12e   :  { %vm620_vm12 = vcmp.eq.s32.totalorder %v1119_v59, 1  ;;  %vm621_vm13 = vcmp.eq.s32.totalorder %v1117_v58, 1 }
 0x131   :  { %v1121_v60 = vpop.permute.xlu1 %596  ;;  %v594_v61 = vpop.permute.xlu0 %593 }
 0x132   :  { %vm622_vm5 = vcmp.eq.s32.totalorder %v594_v61, 1  ;;  %vm623_vm14 = vcmp.eq.s32.totalorder %v1121_v60, 1 }
 0x135   :  { %v1123_v62 = vpop.permute.xlu1 %602  ;;  %v600_v63 = vpop.permute.xlu0 %599 }
 0x136   :  { %vm624_vm7 = vcmp.eq.s32.totalorder %v600_v63, 1  ;;  %vm625_vm15 = vcmp.eq.s32.totalorder %v1123_v62, 1 }
 0x139   :  { %v461_v0 = vpop.permute.xlu1 %460  ;;  %v606_v1 = vpop.permute.xlu0 %605 }
 0x13a   :  { %v534_v2 = vmul.f32 %v770_v35, %v461_v0  ;;  %vm626_vm9 = vcmp.eq.s32.totalorder %v606_v1, 1 }
 0x13c   :  { %v630_v3 = vsel %vm614_vm1, %v534_v2, 0.0 }
 0x13d   :  { %646 = vst [vmem:[%s1186_s2 + $0x8] sm:$0xff] %v630_v3  ;;  %v466_v4 = vpop.permute.xlu1 %465  ;;  %v456_v5 = vpop.permute.xlu0 %455 }
 0x13e   :  { %v535_v6 = vmul.f32 %v466_v4, %v269_v41  ;;  %v533_v7 = vmul.f32 %v456_v5, %v259_v37 }
 0x140   :  { %v631_v8 = vsel %vm615_vm3, %v535_v6, 0.0  ;;  %v629_v9 = vsel %vm613_vm2, %v533_v7, 0.0 }
 0x141   :  { %647 = vst [vmem:[%s1186_s2 + $0x10] sm:$0xff] %v631_v8  ;;  %645 = vst [vmem:[%s1186_s2] sm:$0xff] %v629_v9  ;;  %v471_v10 = vpop.permute.xlu1 %470  ;;  %v501_v11 = vpop.permute.xlu0 %500 }
 0x142   :  { %v536_v12 = vmul.f32 %v773_v39, %v471_v10  ;;  %v542_v13 = vmul.f32 %v782_v36, %v501_v11 }
 0x144   :  { %v632_v14 = vsel %vm616_vm4, %v536_v12, 0.0  ;;  %v638_v15 = vsel %vm622_vm5, %v542_v13, 0.0 }
 0x145   :  { %648 = vst [vmem:[%s1186_s2 + $0x18] sm:$0xff] %v632_v14  ;;  %654 = vst [vmem:[%s1186_s2 + $0x48] sm:$0xff] %v638_v15  ;;  %v476_v16 = vpop.permute.xlu1 %475  ;;  %v511_v17 = vpop.permute.xlu0 %510 }
 0x146   :  { %v537_v18 = vmul.f32 %v476_v16, %v279_v45  ;;  %v544_v19 = vmul.f32 %v785_v40, %v511_v17 }
 0x148   :  { %v633_v20 = vsel %vm617_vm6, %v537_v18, 0.0  ;;  %v640_v21 = vsel %vm624_vm7, %v544_v19, 0.0 }
 0x149   :  { %649 = vst [vmem:[%s1186_s2 + $0x20] sm:$0xff] %v633_v20  ;;  %656 = vst [vmem:[%s1186_s2 + $0x58] sm:$0xff] %v640_v21  ;;  %v481_v22 = vpop.permute.xlu1 %480  ;;  %v521_v23 = vpop.permute.xlu0 %520 }
 0x14a   :  { %v538_v24 = vmul.f32 %v776_v43, %v481_v22  ;;  %v546_v25 = vmul.f32 %v788_v44, %v521_v23 }
 0x14c   :  { %v634_v26 = vsel %vm618_vm8, %v538_v24, 0.0  ;;  %v642_v27 = vsel %vm626_vm9, %v546_v25, 0.0 }
 0x14d   :  { %650 = vst [vmem:[%s1186_s2 + $0x28] sm:$0xff] %v634_v26  ;;  %658 = vst [vmem:[%s1186_s2 + $0x68] sm:$0xff] %v642_v27  ;;  %v486_v28 = vpop.permute.xlu1 %485  ;;  %v531_v29 = vpop.permute.xlu0 %530 }
 0x14e   :  { %v539_v30 = vmul.f32 %v486_v28, %v1113_v49  ;;  %v548_v32 = vmul.f32 %v1111_v48, %v531_v29 }
 0x150   :  { %v635_v31 = vsel %vm619_vm10, %v539_v30, 0.0 }
 0x151   :  { %651 = vst [vmem:[%s1186_s2 + $0x30] sm:$0xff] %v635_v31  ;;  %v491_v33 = vpop.permute.xlu1 %490  ;;  %v612_v34 = vpop.permute.xlu0 %611 }
 0x152   :  { %v540_v35 = vmul.f32 %v1109_v47, %v491_v33  ;;  %vm628_vm11 = vcmp.eq.s32.totalorder %v612_v34, 1 }
 0x153   :  { %v644_v36 = vsel %vm628_vm11, %v548_v32, 0.0 }
 0x154   :  { %v636_v37 = vsel %vm620_vm12, %v540_v35, 0.0  ;;  %660 = vst [vmem:[%s1186_s2 + $0x78] sm:$0xff] %v644_v36 }
 0x155   :  { %652 = vst [vmem:[%s1186_s2 + $0x38] sm:$0xff] %v636_v37  ;;  %v496_v39 = vpop.permute.xlu1 %495 }
 0x156   :  { %v541_v40 = vmul.f32 %v496_v39, %v1103_v38 }
 0x158   :  { %v637_v41 = vsel %vm621_vm13, %v541_v40, 0.0 }
 0x159   :  { %653 = vst [vmem:[%s1186_s2 + $0x40] sm:$0xff] %v637_v41  ;;  %v506_v43 = vpop.permute.xlu1 %505 }
 0x15a   :  { %v543_v44 = vmul.f32 %v506_v43, %v1105_v42 }
 0x15c   :  { %v639_v45 = vsel %vm623_vm14, %v543_v44, 0.0 }
 0x15d   :  { %655 = vst [vmem:[%s1186_s2 + $0x50] sm:$0xff] %v639_v45  ;;  %v516_v47 = vpop.permute.xlu1 %515 }
 0x15e   :  { %v545_v38 = vmul.f32 %v516_v47, %v1107_v46 }
 0x160   :  { %v641_v48 = vsel %vm625_vm15, %v545_v38, 0.0 }
 0x161   :  { %657 = vst [vmem:[%s1186_s2 + $0x60] sm:$0xff] %v641_v48  ;;  %v526_v49 = vpop.permute.xlu1 %525 }
 0x162   :  { %v547_v42 = vmul.f32 %v526_v49, %v1115_v50 }
 0x165   :  { %v609_v51 = vpop.permute.xlu1 %608 }
 0x166   :  { %vm627_vm0 = vcmp.eq.s32.totalorder %v609_v51, 1 }
 0x167   :  { %v643_v52 = vsel %vm627_vm0, %v547_v42, 0.0 }
 0x168   :  { %659 = vst [vmem:[%s1186_s2 + $0x70] sm:$0xff] %v643_v52 }

</bundles_post_ra>
